<compile_context>
chip_gen: v5e
topology: v5e:2x2
jax: 0.10.0
libtpu: 0.0.40
codegen_flags: <defaults>
</compile_context>

<pallas_src>
import functools
import math

import jax
import jax.numpy as jnp
from jax.experimental import pallas as pl
from jax.experimental.pallas import tpu as pltpu


# ----------------------------------------------------------------------------
# tiling helpers
# ----------------------------------------------------------------------------
_FUSED_MAX_ELEMS = 1 << 19   # ~2 MiB f32 of x resident -> take the fused path
_BLOCK_MAX_ELEMS = 1 << 20   # ~4 MiB f32 per streamed block in the tiled path


def _aligned_divisor(n: int, align: int, max_tile: int) -> int:
    """Largest multiple-of-`align` divisor of n that is <= max_tile; else n."""
    t = min(max_tile, n)
    t -= t % align
    while t >= align:
        if n % t == 0:
            return t
        t -= align
    return n


def _pick_row_tile(rows: int, lanes: int) -> int:
    """Row tile for the gate pass: keep each block around <= 4 MiB of f32."""
    max_rows = max(8, _BLOCK_MAX_ELEMS // max(lanes, 1))
    if rows <= max_rows:
        return rows
    return _aligned_divisor(rows, 8, max_rows)


# ----------------------------------------------------------------------------
# Fused single-kernel path (x resident in VMEM): squeeze + excite + gate
# ----------------------------------------------------------------------------
def _fused_kernel_s1(c_total: int):
    inv_c = 1.0 / float(c_total)

    def kernel(x_ref, w1_ref, w2_ref, o_ref):
        x = x_ref[...]                                        # (T, C)
        xf = x.astype(jnp.float32)
        m = jnp.sum(xf, axis=1, keepdims=True) * inv_c        # (T, 1) lane reduce
        # torch's broadcast-assignment of the scalar row mean into s[t].
        s = jnp.broadcast_to(m, xf.shape)                     # (T, C)
        h = jnp.maximum(
            jnp.dot(w1_ref[...], s, preferred_element_type=jnp.float32), 0.0)
        z = jnp.dot(w2_ref[...], h, preferred_element_type=jnp.float32)
        g = jax.nn.sigmoid(z)                                 # (T, C)
        o_ref[...] = (xf * g).astype(o_ref.dtype)

    return kernel


def _fused_kernel_sc(c_total: int):
    inv_c = 1.0 / float(c_total)

    def kernel(x_ref, w1_ref, w2_ref, o_ref):
        x = x_ref[...]                                        # (T, C, S), S == C
        xf = x.astype(jnp.float32)
        s = jnp.sum(xf, axis=1) * inv_c                       # (T, S) channel mean
        h = jnp.maximum(
            jnp.dot(w1_ref[...], s, preferred_element_type=jnp.float32), 0.0)
        z = jnp.dot(w2_ref[...], h, preferred_element_type=jnp.float32)
        g = jax.nn.sigmoid(z)                                 # (T, C)
        o_ref[...] = (xf * g[:, :, None]).astype(o_ref.dtype)

    return kernel


# ----------------------------------------------------------------------------
# Tiled Pass A: squeeze (channel mean) + excite (tiny matmuls + sigmoid) -> g
# ----------------------------------------------------------------------------
def _squeeze_excite_kernel_sc(c_total: int):
    inv_c = 1.0 / float(c_total)

    def kernel(x_ref, w1_ref, w2_ref, g_ref, acc_ref):
        ci = pl.program_id(0)

        @pl.when(ci == 0)
        def _():
            acc_ref[...] = jnp.zeros_like(acc_ref)

        # Partial channel sum for this tile: (T, tc, S) -> (T, S).
        acc_ref[...] += jnp.sum(x_ref[...].astype(jnp.float32), axis=1)

        @pl.when(ci == pl.num_programs(0) - 1)
        def _():
            s = acc_ref[...] * inv_c                          # (T, S) == (T, C)
            h = jnp.maximum(
                jnp.dot(w1_ref[...], s, preferred_element_type=jnp.float32), 0.0)
            z = jnp.dot(w2_ref[...], h, preferred_element_type=jnp.float32)
            g_ref[...] = jax.nn.sigmoid(z)                    # (T, C)

    return kernel


def _compute_gate_sc(x3, w1, w2):
    T, C, S = x3.shape
    max_tc = max(8, _BLOCK_MAX_ELEMS // max(T * S, 1))
    tc = _aligned_divisor(C, 8, max_tc)                       # channel tile
    return pl.pallas_call(
        _squeeze_excite_kernel_sc(C),
        grid=(C // tc,),
        in_specs=[
            pl.BlockSpec((T, tc, S), lambda i: (0, i, 0)),
            pl.BlockSpec(w1.shape, lambda i: (0, 0)),
            pl.BlockSpec(w2.shape, lambda i: (0, 0)),
        ],
        out_specs=pl.BlockSpec((T, C), lambda i: (0, 0)),
        out_shape=jax.ShapeDtypeStruct((T, C), jnp.float32),
        scratch_shapes=[pltpu.VMEM((T, S), jnp.float32)],
        compiler_params=pltpu.CompilerParams(
            dimension_semantics=("arbitrary",)),
    )(x3, w1, w2)


def _squeeze_excite_kernel_s1(c_total: int):
    inv_c = 1.0 / float(c_total)

    def kernel(x_ref, w1_ref, w2_ref, g_ref, acc_ref):
        ci = pl.program_id(0)

        @pl.when(ci == 0)
        def _():
            acc_ref[...] = jnp.zeros_like(acc_ref)

        # Partial lane (channel) sum for this tile: (T, tc) -> (T, 1).
        acc_ref[...] += jnp.sum(x_ref[...].astype(jnp.float32), axis=1,
                                keepdims=True)

        @pl.when(ci == pl.num_programs(0) - 1)
        def _():
            m = acc_ref[...] * inv_c                          # (T, 1)
            s = jnp.broadcast_to(m, g_ref.shape)              # (T, C)
            h = jnp.maximum(
                jnp.dot(w1_ref[...], s, preferred_element_type=jnp.float32), 0.0)
            z = jnp.dot(w2_ref[...], h, preferred_element_type=jnp.float32)
            g_ref[...] = jax.nn.sigmoid(z)                    # (T, C)

    return kernel


def _compute_gate_s1(x2, w1, w2):
    T, C = x2.shape
    max_tc = max(128, _BLOCK_MAX_ELEMS // max(T, 1))
    tc = _aligned_divisor(C, 128, max_tc)                     # lane (channel) tile
    return pl.pallas_call(
        _squeeze_excite_kernel_s1(C),
        grid=(C // tc,),
        in_specs=[
            pl.BlockSpec((T, tc), lambda i: (0, i)),
            pl.BlockSpec(w1.shape, lambda i: (0, 0)),
            pl.BlockSpec(w2.shape, lambda i: (0, 0)),
        ],
        out_specs=pl.BlockSpec((T, C), lambda i: (0, 0)),
        out_shape=jax.ShapeDtypeStruct((T, C), jnp.float32),
        scratch_shapes=[pltpu.VMEM((T, 1), jnp.float32)],
        compiler_params=pltpu.CompilerParams(
            dimension_semantics=("arbitrary",)),
    )(x2, w1, w2)


# ----------------------------------------------------------------------------
# Tiled Pass B: lane-dense, row-tiled gate out = x * g  (mem-bound elementwise)
# ----------------------------------------------------------------------------
def _gate_kernel(x_ref, g_ref, o_ref):
    # g block is either (br, lanes) (full gate) or (br, 1) (per-row scale).
    o_ref[...] = x_ref[...] * g_ref[...].astype(x_ref.dtype)


def _apply_gate(xr, gr, out_dtype):
    rows, lanes = xr.shape
    br = _pick_row_tile(rows, lanes)
    return pl.pallas_call(
        _gate_kernel,
        grid=(rows // br,),
        in_specs=[
            pl.BlockSpec((br, lanes), lambda i: (i, 0)),
            pl.BlockSpec((br, gr.shape[1]), lambda i: (i, 0)),
        ],
        out_specs=pl.BlockSpec((br, lanes), lambda i: (i, 0)),
        out_shape=jax.ShapeDtypeStruct((rows, lanes), out_dtype),
        compiler_params=pltpu.CompilerParams(
            dimension_semantics=("parallel",)),
    )(xr, gr)


# ----------------------------------------------------------------------------
# Public wrapper
# ----------------------------------------------------------------------------
@functools.partial(jax.jit, static_argnames=("fused_max_elems",))
def squeeze_and_excite(x, w1, w2, *, fused_max_elems=_FUSED_MAX_ELEMS):
    """x: (T, C, D, H, W); w1: (T//r, T); w2: (T, T//r). Returns x's shape/dtype."""
    T, C, D, H, W = x.shape
    # TODO(synk): the reference squeeze's broadcast assignment (s[t] = x[t].mean(0))
    # only type-checks for D == H == 1 and W in {1, C}; other shapes raise in
    # PyTorch too, so we support exactly that family.
    assert D == 1 and H == 1 and W in (1, C)
    S = D * H * W

    w1f = w1.astype(jnp.float32)
    w2f = w2.astype(jnp.float32)

    # Fused single-kernel path: x stays resident in VMEM (1 read + 1 write of x).
    if T * C * S <= fused_max_elems:
        if S == 1:
            out = pl.pallas_call(
                _fused_kernel_s1(C),
                out_shape=jax.ShapeDtypeStruct((T, C), x.dtype),
            )(x.reshape(T, C), w1f, w2f)
        else:                                                 # S == C
            out = pl.pallas_call(
                _fused_kernel_sc(C),
                out_shape=jax.ShapeDtypeStruct((T, C, S), x.dtype),
            )(x.reshape(T, C, S), w1f, w2f)
        return out.reshape(x.shape)

    # Tiled two-pass path (large x).
    if S == 1:
        x2 = x.reshape(T, C)
        g = _compute_gate_s1(x2, w1f, w2f)                    # (T, C) f32
        xr = x2                                               # lanes = C
        gr = g
    else:                                                     # S == C
        x3 = x.reshape(T, C, S)
        g = _compute_gate_sc(x3, w1f, w2f)                    # (T, C) f32
        xr = x3.reshape(T * C, S)                             # lanes = S
        gr = g.reshape(T * C, 1)                              # per-row scale

    out2 = _apply_gate(xr, gr, x.dtype)
    return out2.reshape(x.shape)


# ----------------------------------------------------------------------------
# Pure-JAX transcription of the PyTorch module (verification only)
# ----------------------------------------------------------------------------
def _torch_reference(x, w1, w2):
    T, C, D, H, W = x.shape
    m = jnp.mean(x, axis=1).reshape(T, D * H * W)             # x[t].mean(0)
    s = jnp.broadcast_to(m, (T, C)) if D * H * W == 1 else m
    d = s.T                                                   # permute(1, 0) -> (C, T)
    d = jnp.maximum(d @ w1.T, 0.0)                            # relu(w1(d))
    d = jax.nn.sigmoid(d @ w2.T)                              # sigmoid(w2(d))
    d = d.T                                                   # permute(1, 0) -> (T, C)
    return d[:, :, None, None, None] * x                      # view(...,1,1,1) * x


if __name__ == "__main__":
    T, C, r = 8, 4, 1

    key = jax.random.PRNGKey(0)
    k1, k2, kxa, kxb = jax.random.split(key, 4)

    # nn.Linear default init (bias=False): U(-1/sqrt(fan_in), 1/sqrt(fan_in)).
    b1 = 1.0 / math.sqrt(T)
    w1 = jax.random.uniform(k1, (T // r, T), jnp.float32, -b1, b1)
    b2 = 1.0 / math.sqrt(T // r)
    w2 = jax.random.uniform(k2, (T, T // r), jnp.float32, -b2, b2)

    # Shape family the torch forward actually accepts: (T, C, 1, 1, W), W in {1, C}.
    x_a = jax.random.normal(kxa, (T, C, 1, 1, 1), jnp.float32)
    x_b = jax.random.normal(kxb, (T, C, 1, 1, C), jnp.float32)

    ok = True
    for x in (x_a, x_b):
        y_ref = _torch_reference(x, w1, w2)
        # Exercise both the fused path (default) and the tiled two-pass path.
        for fmax in (_FUSED_MAX_ELEMS, 0):
            y = jax.block_until_ready(
                squeeze_and_excite(x, w1, w2, fused_max_elems=fmax))
            ok &= bool(jnp.allclose(y, y_ref, atol=1e-5, rtol=1e-5))

    print("KERNEL_OK" if ok else "KERNEL_MISMATCH")
</pallas_src>

<mosaic_0001>
module attributes {stable_mosaic.version = 11 : i64} {
  func.func @kernel(%arg0: memref<8x4xf32, #tpu.memory_space<vmem>>, %arg1: memref<8x8xf32, #tpu.memory_space<vmem>>, %arg2: memref<8x8xf32, #tpu.memory_space<vmem>>, %arg3: memref<8x4xf32, #tpu.memory_space<vmem>>) attributes {dimension_semantics = [], scalar_prefetch = 0 : i64, scratch_operands = 0 : i64, tpu.core_type = #tpu.core_type<tc>} {
    %c0 = arith.constant 0 : index
    %c0_0 = arith.constant 0 : index
    %0 = vector.load %arg0[%c0, %c0_0] : memref<8x4xf32, #tpu.memory_space<vmem>>, vector<8x4xf32>
    %cst = arith.constant dense<0.000000e+00> : vector<8xf32>
    %1 = vector.multi_reduction <add>, %0, %cst [1] : vector<8x4xf32> to vector<8xf32>
    %2 = vector.shape_cast %1 : vector<8xf32> to vector<8x1xf32>
    %cst_1 = arith.constant 2.500000e-01 : f32
    %3 = vector.broadcast %cst_1 : f32 to vector<8x1xf32>
    %4 = arith.mulf %2, %3 : vector<8x1xf32>
    %5 = vector.shape_cast %4 : vector<8x1xf32> to vector<8x1xf32>
    %6 = vector.broadcast %5 : vector<8x1xf32> to vector<8x4xf32>
    %c0_2 = arith.constant 0 : index
    %c0_3 = arith.constant 0 : index
    %7 = vector.load %arg1[%c0_2, %c0_3] : memref<8x8xf32, #tpu.memory_space<vmem>>, vector<8x8xf32>
    %cst_4 = arith.constant dense<0.000000e+00> : vector<8x4xf32>
    %8 = tpu.matmul %7, %6, %cst_4 {dimension_numbers = #tpu.dot_dimension_numbers<[1], [0], [0], [1], [0, 0, 1, 1], [], []>} : vector<8x8xf32>, vector<8x4xf32>, vector<8x4xf32> -> vector<8x4xf32>
    %cst_5 = arith.constant 0.000000e+00 : f32
    %9 = vector.broadcast %cst_5 : f32 to vector<8x4xf32>
    %10 = arith.maximumf %8, %9 : vector<8x4xf32>
    %c0_6 = arith.constant 0 : index
    %c0_7 = arith.constant 0 : index
    %11 = vector.load %arg2[%c0_6, %c0_7] : memref<8x8xf32, #tpu.memory_space<vmem>>, vector<8x8xf32>
    %cst_8 = arith.constant dense<0.000000e+00> : vector<8x4xf32>
    %12 = tpu.matmul %11, %10, %cst_8 {dimension_numbers = #tpu.dot_dimension_numbers<[1], [0], [0], [1], [0, 0, 1, 1], [], []>} : vector<8x8xf32>, vector<8x4xf32>, vector<8x4xf32> -> vector<8x4xf32>
    %13 = arith.negf %12 : vector<8x4xf32>
    %14 = math.exp %13 : vector<8x4xf32>
    %cst_9 = arith.constant 1.000000e+00 : f32
    %15 = vector.broadcast %cst_9 : f32 to vector<8x4xf32>
    %16 = arith.addf %15, %14 : vector<8x4xf32>
    %17 = arith.divf %15, %16 : vector<8x4xf32>
    %18 = arith.mulf %0, %17 : vector<8x4xf32>
    %c0_10 = arith.constant 0 : index
    %c0_11 = arith.constant 0 : index
    %19 = vector.load %arg3[%c0_10, %c0_11] : memref<8x4xf32, #tpu.memory_space<vmem>>, vector<8x4xf32>
    tpu.vector_store %arg3[%c0_10, %c0_11], %18 {strides = array<i32>} : memref<8x4xf32, #tpu.memory_space<vmem>>, vector<8x4xf32>,
    return
  }
}

</mosaic_0001>

<bundles_post_ra>
// kernel: squeeze_and_excite.1
= control target key start
LH: loop header
LB: loop body
LE: loop exit
PB: predicated region body
PF: predicated region fallthrough
CT: control target
= control target key end

     0   :  { %8 = vsyncpa [#allocation3], 0  ;;  %s144_s15 = smov [#allocation2]   ;;  %s179_s0 = inlined_call_operand.vmem [shape: f32[8,4], index: 0, kind: input, shape index: {}]   ;;  %s180_s1 = inlined_call_operand.vmem [shape: f32[8,8], index: 1, kind: input, shape index: {}]   ;;  %s181_s2 = inlined_call_operand.hbm [shape: f32[8,8], index: 2, kind: input, shape index: {}]   ;;  %s182_s3 = inlined_call_operand.vmem [shape: f32[8,4], index: 3, kind: output, shape index: {}]  }
   0x1   :  { %s18_s14 = sshll.u32 %s181_s2, 4  ;;  %s20_s16 = sshll.u32 %s144_s15, 4  ;;  %s19_s14 = int_to_ptr.hbm [resolvable:$true] %s18_s14  ;;  %s21_s16 = int_to_ptr.vmem [resolvable:$true] %s20_s16 }
   0x2   :  { %23 = dma.hbm_to_vmem [thread:$0]  %s19_s14, 128, %s21_s16, [#allocation3]  }
   0x3   :  { %142 = dma.done.wait [#allocation3], 128  }
   0x4   :  { %143 = vsyncadd [#allocation3], 4294967168  ;;  %vm29_vm0 = vcmask 31744   ;;  %v28_v0 = vld [vmem:[%s179_s0] sm:$0xff]  ;;  %vm35_vm1 = vcmask 64512  }
   0x5   :  { %v30_v1 = vsel %vm29_vm0, %v28_v0, 0.0  ;;  %v34_v4 = vld [vmem:[%s180_s1] sm:$0xff] }
   0x6   :  { %31 = vadd.xlane.f32.xlu0 %v30_v1  ;;  %v60_v7 = vld [vmem:[#allocation2] sm:$0xff] }
  0x79   :  { %v32_v2 = vpop.xlane.xlu0 %31 }
  0x7a   :  { %v33_v3 = vmul.f32 0.25, %v32_v2 }
  0x7c   :  { %54 = vmatpush.msra.mxu0 %v33_v3 }
  0x7d   :  { %110 = vmatmul.msk.f32.vlgmr.msra.gmra.mxu0 %vm35_vm1, %v34_v4 }
  0xfa   :  { %v56_v5 = vpop.f32.mrf.mxu0 }
  0xfb   :  { %v59_v6 = vmax.f32 %v56_v5, 0.0 }
  0xfd   :  { %79 = vmatpush.msra.mxu1 %v59_v6 }
  0xfe   :  { %111 = vmatmul.msk.f32.vlgmr.msra.gmra.mxu1 %vm35_vm1, %v60_v7 }
 0x17b   :  { %v81_v8 = vpop.f32.mrf.mxu1 }
 0x17c   :  { %v112_v9 = vmul.f32 -1.442695, %v81_v8 }
 0x17e   :  { %114 = vpow2.f32 %v112_v9 }
 0x184   :  { %v115_v10 = vpop.eup %114 }
 0x185   :  { %v87_v11 = vadd.f32 1.0, %v115_v10 }
 0x187   :  { %116 = vrcp.f32 %v87_v11  ;;  %v99_v15 = vand.u32 2147483648, %v87_v11  ;;  %v97_v17 = vand.u32 2147483647, %v87_v11  ;;  %vm93_vm3 = vweird.f32 %v87_v11 }
 0x189   :  { %v100_v19 = vor.u32 1.1754944e-38, %v99_v15  ;;  %vm98_vm5 = vcmp.eq.f32.partialorder %v97_v17, 8.507059e+37 }
 0x18d   :  { %v117_v12 = vpop.eup %116 }
 0x18e   :  { %v89_v13 = vmul.f32 %v117_v12, %v87_v11  ;;  %vm94_vm2 = vweird.f32 %v117_v12 }
 0x18f   :  { %vm95_vm4 = vmor %vm93_vm3, %vm94_vm2 }
 0x190   :  { %v90_v14 = vsub.f32 1.0, %v89_v13 }
 0x192   :  { %v91_v16 = vmul.f32 %v117_v12, %v90_v14 }
 0x194   :  { %v92_v18 = vadd.f32 %v117_v12, %v91_v16 }
 0x196   :  { %v96_v20 = vsel %vm95_vm4, %v117_v12, %v92_v18 }
 0x197   :  { %v101_v21 = vsel %vm98_vm5, %v100_v19, %v96_v20 }
 0x198   :  { %v103_v22 = vmul.f32 %v101_v21, %v28_v0 }
 0x19a   :  { %104 = vst.msk [vmem:[%s182_s3] sm:$0xff] %vm29_vm0, %v103_v22 }
 0x19b   :  { %109 = vsyncpa [#allocation3], 1 }

</bundles_post_ra>
